<compile_context>
chip_gen: v7x
topology: tpu7x:2x2x1
jax: 0.10.0
libtpu: 0.0.40
codegen_flags: <defaults>
</compile_context>

<pallas_src>
import math

import jax
import jax.numpy as jnp
from jax.experimental import pallas as pl
from jax.experimental.pallas import tpu as pltpu


_LANES = 512      # last-dim width: multiple of 128 -> unmasked lane-dense stores
_ROW_TILE = 512   # 512 x 512 x 4B = 1 MiB per operand tile


# ---------------------------------------------------------------------------
# Pallas kernels (elementwise, VPU only)
# ---------------------------------------------------------------------------
def _error_kernel(bu_ref, td_ref, o_ref):
    d = bu_ref[...] - td_ref[...]
    # relu(b - t) + relu(t - b)  (== |b - t|, kept as two relus to match spec)
    o_ref[...] = jnp.maximum(d, 0.0) + jnp.maximum(-d, 0.0)


def _error_noise_kernel(bu_ref, td_ref, n_ref, o_ref):
    d = bu_ref[...] - td_ref[...]
    o_ref[...] = jnp.maximum(d, 0.0) + jnp.maximum(-d, 0.0) + n_ref[...]


# ---------------------------------------------------------------------------
# Wrapper: flatten -> lane-dense 2D slab -> single pallas_call -> reshape back
# ---------------------------------------------------------------------------
def error_unit(bottom_up, top_down, noise_key=None):
    """Layer-wise error.  If `noise_key` is given, adds N(0, 0.01) noise
    (the PyTorch module refills the passed tensor with normal(0, 0.01), so
    only the randomness matters, not the tensor's contents)."""
    assert bottom_up.shape == top_down.shape
    shape = bottom_up.shape
    total = math.prod(shape)

    lanes = _LANES
    rows = pl.cdiv(total, lanes)
    tm = min(_ROW_TILE, ((rows + 7) // 8) * 8)   # sublane-aligned row tile
    grid_m = pl.cdiv(rows, tm)
    rows_pad = grid_m * tm
    total_pad = rows_pad * lanes

    def as_slab(a):
        a = a.reshape(-1).astype(jnp.float32)
        if total_pad != total:
            a = jnp.pad(a, (0, total_pad - total))
        return a.reshape(rows_pad, lanes)

    operands = [as_slab(bottom_up), as_slab(top_down)]
    if noise_key is not None:
        # TODO(synk): noise could be generated in-kernel (pltpu.prng_seed +
        # pltpu.stateful_normal) to avoid the extra HBM noise buffer; kept
        # host-side here for portability, with the add fused into the kernel.
        noise = 0.01 * jax.random.normal(noise_key, (rows_pad, lanes), jnp.float32)
        operands.append(noise)
        kernel = _error_noise_kernel
    else:
        kernel = _error_kernel

    spec = pl.BlockSpec((tm, lanes), lambda i: (i, 0))
    bytes_per_operand = total_pad * 4
    out = pl.pallas_call(
        kernel,
        out_shape=jax.ShapeDtypeStruct((rows_pad, lanes), jnp.float32),
        grid=(grid_m,),
        in_specs=[spec] * len(operands),
        out_specs=spec,
        compiler_params=pltpu.CompilerParams(
            dimension_semantics=("parallel",)),
        cost_estimate=pl.CostEstimate(
            flops=4 * total_pad,
            transcendentals=0,
            bytes_accessed=(len(operands) + 1) * bytes_per_operand),
    )(*operands)

    return out.reshape(-1)[:total].reshape(shape)


class ErrorUnitPallas:
    """JAX/Pallas re-implementation of the PyTorch ErrorUnit module."""

    def __init__(self, p=None, l=None, mask=None):
        # ErrorUnit has no parameters.
        del p, l, mask

    def __call__(self, bottom_up, top_down, noise=None):
        # `noise` mirrors the PyTorch arg: if provided, it is treated as a
        # PRNG key and fresh N(0, 0.01) noise is added (the original module
        # overwrites the passed tensor in-place with normal(0, 0.01)).
        return error_unit(bottom_up, top_down, noise_key=noise)


if __name__ == "__main__":
    key = jax.random.PRNGKey(0)
    k_bu, k_td, k_noise = jax.random.split(key, 3)

    # Small layer-wise feature maps: batch=2, channels=32, spatial 16x16.
    shape = (2, 32, 16, 16)
    bottom_up = jax.random.normal(k_bu, shape, jnp.float32)
    top_down = jax.random.normal(k_td, shape, jnp.float32)

    unit = ErrorUnitPallas(p=None, l=0)

    # No-noise path (the module's default).
    err = unit(bottom_up, top_down)
    err = jax.block_until_ready(err)
    ref = jnp.maximum(bottom_up - top_down, 0.0) + jnp.maximum(top_down - bottom_up, 0.0)
    assert err.shape == shape
    assert jnp.allclose(err, ref, atol=1e-6)

    # Noise path (fused add of N(0, 0.01) inside the same kernel).
    err_n = unit(bottom_up, top_down, noise=k_noise)
    err_n = jax.block_until_ready(err_n)
    assert err_n.shape == shape
    assert float(jnp.max(jnp.abs(err_n - ref))) < 0.1  # noise std is 0.01

    print("KERNEL_OK")
</pallas_src>

<mosaic_0001>
module attributes {stable_mosaic.version = 11 : i64} {
  func.func @_error_kernel(%arg0: i32, %arg1: memref<32x512xf32, #tpu.memory_space<vmem>>, %arg2: memref<32x512xf32, #tpu.memory_space<vmem>>, %arg3: memref<32x512xf32, #tpu.memory_space<vmem>>) attributes {dimension_semantics = [#tpu.dimension_semantics<parallel>], iteration_bounds = array<i64: 1>, scalar_prefetch = 0 : i64, scratch_operands = 0 : i64, tpu.core_type = #tpu.core_type<tc>, window_params = [{transform_indices = @transform_0, window_bounds = array<i64: 32, 512>}, {transform_indices = @transform_1, window_bounds = array<i64: 32, 512>}, {transform_indices = @transform_2, window_bounds = array<i64: 32, 512>}]} {
    %c0 = arith.constant 0 : index
    %c0_0 = arith.constant 0 : index
    %0 = vector.load %arg1[%c0, %c0_0] : memref<32x512xf32, #tpu.memory_space<vmem>>, vector<32x512xf32>
    %c0_1 = arith.constant 0 : index
    %c0_2 = arith.constant 0 : index
    %1 = vector.load %arg2[%c0_1, %c0_2] : memref<32x512xf32, #tpu.memory_space<vmem>>, vector<32x512xf32>
    %2 = arith.subf %0, %1 : vector<32x512xf32>
    %cst = arith.constant 0.000000e+00 : f32
    %3 = vector.broadcast %cst : f32 to vector<32x512xf32>
    %4 = arith.maximumf %2, %3 : vector<32x512xf32>
    %cst_3 = arith.constant 0.000000e+00 : f32
    %5 = vector.broadcast %cst_3 : f32 to vector<32x512xf32>
    %6 = arith.subf %5, %2 : vector<32x512xf32>
    %cst_4 = arith.constant 0.000000e+00 : f32
    %7 = vector.broadcast %cst_4 : f32 to vector<32x512xf32>
    %8 = arith.maximumf %6, %7 : vector<32x512xf32>
    %9 = arith.addf %4, %8 : vector<32x512xf32>
    %c0_5 = arith.constant 0 : index
    %c0_6 = arith.constant 0 : index
    %10 = vector.load %arg3[%c0_5, %c0_6] : memref<32x512xf32, #tpu.memory_space<vmem>>, vector<32x512xf32>
    tpu.vector_store %arg3[%c0_5, %c0_6], %9 {strides = array<i32>} : memref<32x512xf32, #tpu.memory_space<vmem>>, vector<32x512xf32>,
    return
  }
  func.func @transform_0(%arg0: i32) -> (i32, i32) {
    %c0_i32 = arith.constant 0 : i32
    %c0_i32_0 = arith.constant 0 : i32
    return %arg0, %c0_i32 : i32, i32
  }
  func.func @transform_1(%arg0: i32) -> (i32, i32) {
    %c0_i32 = arith.constant 0 : i32
    %c0_i32_0 = arith.constant 0 : i32
    return %arg0, %c0_i32 : i32, i32
  }
  func.func @transform_2(%arg0: i32) -> (i32, i32) {
    %c0_i32 = arith.constant 0 : i32
    %c0_i32_0 = arith.constant 0 : i32
    return %arg0, %c0_i32 : i32, i32
  }
}

</mosaic_0001>

<bundles_post_ra>
// kernel: tpu_custom_call.1
= control target key start
LH: loop header
LB: loop body
LE: loop exit
PB: predicated region body
PF: predicated region fallthrough
CT: control target
= control target key end

     0   :  { %7 = vsyncpa [#allocation3], 0  ;;  %s328_s0 = inlined_call_operand.hbm [shape: f32[32,512], index: 0, kind: input, shape index: {}]   ;;  %s329_s1 = inlined_call_operand.hbm [shape: f32[32,512], index: 1, kind: input, shape index: {}]   ;;  %s330_s2 = inlined_call_operand.hbm [shape: f32[32,512], index: 2, kind: output, shape index: {}]  }
   0x1   :  { %8 = vsyncpa [#allocation6], 0 }
   0x2   :  { %9 = vsyncpa [#allocation4], 0  ;;  %s263_s9 = smov [#allocation2]   ;;  %s191_s13 = scalar_lea.hbm %s328_s0, 2048 }
   0x3   :  { %s15_s10 = sshll.u32 %s263_s9, 4  ;;  %p192_p0 = scmp.ne.s32.totalorder %s328_s0, %s191_s13  ;;  %s16_s10 = int_to_ptr.vmem [resolvable:$true] %s15_s10 }
   0x4   :  { %p195_p1 = scmp.lt.u32.totalorder %s191_s13, %s328_s0 }
   0x6   :  { %p197_p2 = pnand %p195_p1, %p192_p0 }
   0x8   :  { %200 = shalt.err (!%p197_p2)
}
   0x9   :  { %s201_s18 = scalar_lea.vmem %s16_s10, 2048  ;;  %p206_p4 = scmp.lt.s32.totalorder %s16_s10, %s16_s10 }
   0xa   :  { %p202_p3 = scmp.ne.s32.totalorder %s16_s10, %s201_s18  ;;  %p207_p5 = scmp.lt.s32.totalorder %s201_s18, %s201_s18 }
   0xc   :  { %p208_p6 = por %p207_p5, %p206_p4 }
   0xe   :  { %p209_p7 = pnand %p208_p6, %p202_p3 }
  0x10   :  { %212 = shalt.err (!%p209_p7)
}
  0x11   :  { %s264_s19 = smov 512   ;;  %s265_s20 = smov 32  }
  0x12   :  { %21 = dma.hbm_to_vmem [thread:$0]  %s328_s0, 2048, %s16_s10, [#allocation3], %s264_s19, %s264_s19, %s265_s20  }
  0x13   :  { %s266_s23 = smov [#allocation5]   ;;  %s213_s27 = scalar_lea.hbm %s329_s1, 2048 }
  0x14   :  { %s27_s24 = sshll.u32 %s266_s23, 4  ;;  %p214_p8 = scmp.ne.s32.totalorder %s329_s1, %s213_s27  ;;  %s28_s24 = int_to_ptr.vmem [resolvable:$true] %s27_s24 }
  0x15   :  { %p217_p9 = scmp.lt.u32.totalorder %s213_s27, %s329_s1 }
  0x17   :  { %p219_p10 = pnand %p217_p9, %p214_p8 }
  0x19   :  { %222 = shalt.err (!%p219_p10)
}
  0x1a   :  { %s223_s4 = scalar_lea.vmem %s28_s24, 2048  ;;  %p228_p12 = scmp.lt.s32.totalorder %s28_s24, %s28_s24 }
  0x1b   :  { %p224_p11 = scmp.ne.s32.totalorder %s28_s24, %s223_s4  ;;  %p229_p13 = scmp.lt.s32.totalorder %s223_s4, %s223_s4 }
  0x1d   :  { %p230_p0 = por %p229_p13, %p228_p12 }
  0x1f   :  { %p231_p1 = pnand %p230_p0, %p224_p11 }
  0x21   :  { %234 = shalt.err (!%p231_p1)
}
  0x22   :  { %33 = dma.hbm_to_vmem [thread:$0]  %s329_s1, 2048, %s28_s24, [#allocation6], %s264_s19, %s264_s19, %s265_s20  }
  0x23   :  { %257 = dma.done.wait [#allocation3], 2048  }
  0x24   :  { %258 = vsyncadd [#allocation3], 4294965248 }
  0x25   :  { %259 = dma.done.wait [#allocation6], 2048  }
  0x26   :  { %260 = vsyncadd [#allocation6], 4294965248  ;;  %v40_v0 = vld [vmem:[#allocation2] sm:$0xff]  ;;  %v41_v2 = vld [vmem:[#allocation2 + $0x8] sm:$0xff]  ;;  %s267_s1 = smov [#allocation7]  }
  0x27   :  { %v56_v1 = vld [vmem:[#allocation5] sm:$0xff]  ;;  %v57_v4 = vld [vmem:[#allocation5 + $0x8] sm:$0xff]  ;;  %v42_v5 = vld [vmem:[#allocation2 + $0x10] sm:$0xff]  ;;  %s173_s6 = sshll.u32 %s267_s1, 4  ;;  %s174_s6 = int_to_ptr.vmem [resolvable:$true] %s173_s6 }
  0x28   :  { %v72_v3 = vsub.f32 %v40_v0, %v56_v1  ;;  %v58_v6 = vld [vmem:[#allocation5 + $0x10] sm:$0xff]  ;;  %v73_v7 = vsub.f32 %v41_v2, %v57_v4  ;;  %v43_v9 = vld [vmem:[#allocation2 + $0x18] sm:$0xff]  ;;  %v44_v11 = vld [vmem:[#allocation2 + $0x20] sm:$0xff]  ;;  %s235_s7 = scalar_lea.vmem %s174_s6, 2048  ;;  %p240_p3 = scmp.lt.s32.totalorder %s174_s6, %s174_s6 }
  0x29   :  { %v74_v8 = vsub.f32 %v42_v5, %v58_v6  ;;  %v59_v10 = vld [vmem:[#allocation5 + $0x18] sm:$0xff]  ;;  %v60_v15 = vld [vmem:[#allocation5 + $0x20] sm:$0xff]  ;;  %v45_v16 = vld [vmem:[#allocation2 + $0x28] sm:$0xff]  ;;  %p236_p2 = scmp.ne.s32.totalorder %s174_s6, %s235_s7  ;;  %p241_p4 = scmp.lt.s32.totalorder %s235_s7, %s235_s7 }
  0x2a   :  { %v88_v12 = vmax.f32 %v72_v3, 0.0  ;;  %v104_v13 = vsub.f32 0.0, %v72_v3  ;;  %v75_v14 = vsub.f32 %v43_v9, %v59_v10  ;;  %v61_v17 = vld [vmem:[#allocation5 + $0x28] sm:$0xff]  ;;  %v89_v18 = vmax.f32 %v73_v7, 0.0  ;;  %v46_v22 = vld [vmem:[#allocation2 + $0x30] sm:$0xff]  ;;  %v47_v28 = vld [vmem:[#allocation2 + $0x38] sm:$0xff] }
  0x2b   :  { %v105_v19 = vsub.f32 0.0, %v73_v7  ;;  %v90_v20 = vmax.f32 %v74_v8, 0.0  ;;  %v106_v21 = vsub.f32 0.0, %v74_v8  ;;  %v62_v23 = vld [vmem:[#allocation5 + $0x30] sm:$0xff]  ;;  %v76_v27 = vsub.f32 %v44_v11, %v60_v15  ;;  %v63_v33 = vld [vmem:[#allocation5 + $0x38] sm:$0xff]  ;;  %v48_v34 = vld [vmem:[#allocation2 + $0x40] sm:$0xff]  ;;  %p242_p5 = por %p241_p4, %p240_p3 }
  0x2c   :  { %v120_v24 = vmax.f32 %v104_v13, 0.0  ;;  %v91_v25 = vmax.f32 %v75_v14, 0.0  ;;  %v107_v26 = vsub.f32 0.0, %v75_v14  ;;  %v77_v31 = vsub.f32 %v45_v16, %v61_v17  ;;  %v64_v35 = vld [vmem:[#allocation5 + $0x40] sm:$0xff]  ;;  %v49_v40 = vld [vmem:[#allocation2 + $0x48] sm:$0xff]  ;;  %v50_v42 = vld [vmem:[#allocation2 + $0x50] sm:$0xff] }
  0x2d   :  { %v121_v29 = vmax.f32 %v105_v19, 0.0  ;;  %v122_v30 = vmax.f32 %v106_v21, 0.0  ;;  %v78_v32 = vsub.f32 %v46_v22, %v62_v23  ;;  %v92_v38 = vmax.f32 %v76_v27, 0.0  ;;  %v65_v41 = vld [vmem:[#allocation5 + $0x48] sm:$0xff]  ;;  %v66_v47 = vld [vmem:[#allocation5 + $0x50] sm:$0xff]  ;;  %v51_v48 = vld [vmem:[#allocation2 + $0x58] sm:$0xff]  ;;  %p243_p6 = pnand %p242_p5, %p236_p2 }
  0x2e   :  { %v136_v36 = vadd.f32 %v120_v24, %v88_v12  ;;  %v123_v37 = vmax.f32 %v107_v26, 0.0  ;;  %v108_v39 = vsub.f32 0.0, %v76_v27  ;;  %v93_v45 = vmax.f32 %v77_v31, 0.0  ;;  %v67_v49 = vld [vmem:[#allocation5 + $0x58] sm:$0xff]  ;;  %v52_v2 = vld [vmem:[#allocation2 + $0x60] sm:$0xff]  ;;  %v53_v4 = vld [vmem:[#allocation2 + $0x68] sm:$0xff] }
  0x2f   :  { %v137_v43 = vadd.f32 %v121_v29, %v89_v18  ;;  %v138_v44 = vadd.f32 %v122_v30, %v90_v20  ;;  %v109_v46 = vsub.f32 0.0, %v77_v31  ;;  %v94_v52 = vmax.f32 %v78_v32, 0.0  ;;  %v68_v3 = vld [vmem:[#allocation5 + $0x60] sm:$0xff]  ;;  %v69_v9 = vld [vmem:[#allocation5 + $0x68] sm:$0xff]  ;;  %v54_v10 = vld [vmem:[#allocation2 + $0x70] sm:$0xff] }
  0x30   :  { %152 = vst [vmem:[#allocation7] sm:$0xff] %v136_v36  ;;  %v139_v50 = vadd.f32 %v123_v37, %v91_v25  ;;  %v124_v51 = vmax.f32 %v108_v39, 0.0  ;;  %v110_v53 = vsub.f32 0.0, %v78_v32  ;;  %v79_v55 = vsub.f32 %v47_v28, %v63_v33  ;;  %v70_v11 = vld [vmem:[#allocation5 + $0x70] sm:$0xff]  ;;  %v55_v24 = vld [vmem:[#allocation2 + $0x78] sm:$0xff] }
  0x31   :  { %153 = vst [vmem:[#allocation7 + $0x8] sm:$0xff] %v137_v43  ;;  %154 = vst [vmem:[#allocation7 + $0x10] sm:$0xff] %v138_v44  ;;  %v125_v54 = vmax.f32 %v109_v46, 0.0  ;;  %v80_v56 = vsub.f32 %v48_v34, %v64_v35  ;;  %v81_v57 = vsub.f32 %v49_v40, %v65_v41  ;;  %v82_v60 = vsub.f32 %v50_v42, %v66_v47  ;;  %v71_v25 = vld [vmem:[#allocation5 + $0x78] sm:$0xff] }
  0x32   :  { %155 = vst [vmem:[#allocation7 + $0x18] sm:$0xff] %v139_v50  ;;  %v140_v58 = vadd.f32 %v124_v51, %v92_v38  ;;  %v126_v59 = vmax.f32 %v110_v53, 0.0  ;;  %v83_v61 = vsub.f32 %v51_v48, %v67_v49  ;;  %v95_v63 = vmax.f32 %v79_v55, 0.0 }
  0x33   :  { %v141_v62 = vadd.f32 %v125_v54, %v93_v45  ;;  %v111_v0 = vsub.f32 0.0, %v79_v55  ;;  %v96_v1 = vmax.f32 %v80_v56, 0.0  ;;  %v112_v6 = vsub.f32 0.0, %v80_v56 }
  0x34   :  { %156 = vst [vmem:[#allocation7 + $0x20] sm:$0xff] %v140_v58  ;;  %v142_v5 = vadd.f32 %v126_v59, %v94_v52  ;;  %v97_v7 = vmax.f32 %v81_v57, 0.0  ;;  %v113_v8 = vsub.f32 0.0, %v81_v57  ;;  %v98_v13 = vmax.f32 %v82_v60, 0.0 }
  0x35   :  { %157 = vst [vmem:[#allocation7 + $0x28] sm:$0xff] %v141_v62  ;;  %v127_v12 = vmax.f32 %v111_v0, 0.0  ;;  %v114_v14 = vsub.f32 0.0, %v82_v60  ;;  %v99_v15 = vmax.f32 %v83_v61, 0.0  ;;  %v128_v16 = vmax.f32 %v112_v6, 0.0 }
  0x36   :  { %158 = vst [vmem:[#allocation7 + $0x30] sm:$0xff] %v142_v5  ;;  %v129_v17 = vmax.f32 %v113_v8, 0.0  ;;  %v115_v18 = vsub.f32 0.0, %v83_v61  ;;  %v84_v19 = vsub.f32 %v52_v2, %v68_v3  ;;  %v85_v22 = vsub.f32 %v53_v4, %v69_v9 }
  0x37   :  { %v143_v20 = vadd.f32 %v127_v12, %v95_v63  ;;  %v130_v21 = vmax.f32 %v114_v14, 0.0  ;;  %v86_v23 = vsub.f32 %v54_v10, %v70_v11  ;;  %v144_v26 = vadd.f32 %v128_v16, %v96_v1 }
  0x38   :  { %v145_v27 = vadd.f32 %v129_v17, %v97_v7  ;;  %v131_v28 = vmax.f32 %v115_v18, 0.0  ;;  %v100_v29 = vmax.f32 %v84_v19, 0.0  ;;  %v116_v31 = vsub.f32 0.0, %v84_v19 }
  0x39   :  { %159 = vst [vmem:[#allocation7 + $0x38] sm:$0xff] %v143_v20  ;;  %v146_v30 = vadd.f32 %v130_v21, %v98_v13  ;;  %v101_v32 = vmax.f32 %v85_v22, 0.0  ;;  %v117_v33 = vsub.f32 0.0, %v85_v22  ;;  %160 = vst [vmem:[#allocation7 + $0x40] sm:$0xff] %v144_v26  ;;  %v102_v35 = vmax.f32 %v86_v23, 0.0 }
  0x3a   :  { %161 = vst [vmem:[#allocation7 + $0x48] sm:$0xff] %v145_v27  ;;  %v147_v34 = vadd.f32 %v131_v28, %v99_v15  ;;  %v118_v36 = vsub.f32 0.0, %v86_v23  ;;  %v87_v37 = vsub.f32 %v55_v24, %v71_v25  ;;  %v132_v38 = vmax.f32 %v116_v31, 0.0 }
  0x3b   :  { %162 = vst [vmem:[#allocation7 + $0x50] sm:$0xff] %v146_v30  ;;  %v133_v39 = vmax.f32 %v117_v33, 0.0 }
  0x3c   :  { %163 = vst [vmem:[#allocation7 + $0x58] sm:$0xff] %v147_v34  ;;  %v134_v40 = vmax.f32 %v118_v36, 0.0  ;;  %v103_v41 = vmax.f32 %v87_v37, 0.0  ;;  %v119_v42 = vsub.f32 0.0, %v87_v37  ;;  %v148_v43 = vadd.f32 %v132_v38, %v100_v29 }
  0x3d   :  { %v149_v44 = vadd.f32 %v133_v39, %v101_v32 }
  0x3e   :  { %v150_v45 = vadd.f32 %v134_v40, %v102_v35  ;;  %v135_v46 = vmax.f32 %v119_v42, 0.0  ;;  %164 = vst [vmem:[#allocation7 + $0x60] sm:$0xff] %v148_v43 }
  0x3f   :  { %165 = vst [vmem:[#allocation7 + $0x68] sm:$0xff] %v149_v44 }
  0x40   :  { %166 = vst [vmem:[#allocation7 + $0x70] sm:$0xff] %v150_v45  ;;  %v151_v47 = vadd.f32 %v135_v46, %v103_v41 }
  0x42   :  { %167 = vst [vmem:[#allocation7 + $0x78] sm:$0xff] %v151_v47 }
  0x43   :  { %246 = shalt.err (!%p243_p6)
}
  0x44   :  { %s247_s10 = scalar_lea.hbm %s330_s2, 2048 }
  0x45   :  { %p248_p7 = scmp.ne.s32.totalorder %s330_s2, %s247_s10  ;;  %p251_p8 = scmp.lt.u32.totalorder %s247_s10, %s330_s2 }
  0x47   :  { %p253_p9 = pnand %p251_p8, %p248_p7 }
  0x49   :  { %256 = shalt.err (!%p253_p9)
}
  0x4a   :  { %179 = dma.vmem_to_hbm [thread:$0]  %s174_s6, 2048, %s330_s2, [#allocation4], %s264_s19, %s264_s19, %s265_s20  }
  0x4b   :  { %261 = dma.done.wait [#allocation4], 2048  }
  0x4c   :  { %262 = vsyncadd [#allocation4], 4294965248 }
  0x4d   :  { %183 = vsyncpa [#allocation3], 1 }
  0x4e   :  { %184 = vsyncpa [#allocation6], 1 }
  0x4f   :  { %185 = vsyncpa [#allocation4], 1 }

</bundles_post_ra>
